<compile_context>
chip_gen: v7x
topology: tpu7x:2x2x1
jax: 0.10.0
libtpu: 0.0.40
codegen_flags: <defaults>
</compile_context>

<pallas_src>
import functools

import jax
import jax.numpy as jnp
from jax import lax
from jax.experimental import pallas as pl
from jax.experimental.pallas import tpu as pltpu


def _xca_kernel(x_ref, wq_ref, wk_ref, wv_ref, wp_ref, bp_ref, tcol_ref, mask_ref,
                o_ref,
                qss_ref, kss_ref, g_ref,
                *, chunk_n, n_chunks):
    # x_ref:    (1, N, C)  VMEM  cdt (f32 or bf16)
    # wq/wk/wv/wp_ref: (C, C) VMEM cdt, pre-transposed to (in_features, out_features)
    # bp_ref:   (1, C)     VMEM  f32   proj bias
    # tcol_ref: (C, 1)     VMEM  f32   per-query-channel temperature
    # mask_ref: (C, C)     VMEM  f32   0 inside head blocks, -1e30 outside
    # o_ref:    (1, N, C)  VMEM  out dtype
    # qss_ref:  (C, 1) f32 scratch  (sum over tokens of q^2, column layout)
    # kss_ref:  (1, C) f32 scratch  (sum over tokens of k^2, row layout)
    # g_ref:    (C, C) f32 scratch  (token-contracted gram, reused as softmaxed attn)
    cdt = x_ref.dtype
    eps2 = jnp.float32(1e-24)  # (torch F.normalize eps = 1e-12) ** 2

    def x_chunk(ci):
        if n_chunks == 1:
            return x_ref[0]                                   # static full slab
        off = pl.multiple_of(ci * chunk_n, chunk_n)
        return x_ref[0, pl.ds(off, chunk_n), :]

    def store_chunk(ci, val):
        if n_chunks == 1:
            o_ref[0] = val
        else:
            off = pl.multiple_of(ci * chunk_n, chunk_n)
            o_ref[0, pl.ds(off, chunk_n), :] = val

    # Fresh accumulators for this batch slab (scratch persists across grid steps).
    qss_ref[...] = jnp.zeros_like(qss_ref)
    kss_ref[...] = jnp.zeros_like(kss_ref)
    g_ref[...] = jnp.zeros_like(g_ref)

    ones_col = jnp.ones((chunk_n, 1), jnp.float32)

    # ---------- pass 1: accumulate sums of squares and the (C, C) gram ----------
    @pl.loop(0, n_chunks)
    def _(ci):
        xb = x_chunk(ci)                                                     # (cn, C)
        q = jnp.dot(xb, wq_ref[...], preferred_element_type=jnp.float32)     # (cn, C) f32
        k = jnp.dot(xb, wk_ref[...], preferred_element_type=jnp.float32)     # (cn, C) f32
        # Column-layout reduction via matvec: avoids a (1,C)->(C,1) relayout later.
        qss_ref[...] += lax.dot_general(q * q, ones_col,
                                        (((0,), (0,)), ((), ())),
                                        preferred_element_type=jnp.float32)  # (C, 1)
        kss_ref[...] += jnp.sum(k * k, axis=0, keepdims=True)                # (1, C)
        # Full gram q^T k contracted over the token dim -- one big MXU matmul.
        g_ref[...] += lax.dot_general(q.astype(cdt), k.astype(cdt),
                                      (((0,), (0,)), ((), ())),
                                      preferred_element_type=jnp.float32)    # (C, C)

    # ---------- finalize: fold norms + temperature, mask, softmax over lanes ----------
    inv_q_col = lax.rsqrt(jnp.maximum(qss_ref[...], eps2)) * tcol_ref[...]   # (C, 1)
    inv_k_row = lax.rsqrt(jnp.maximum(kss_ref[...], eps2))                   # (1, C)
    a = g_ref[...] * inv_q_col * inv_k_row + mask_ref[...]                   # (C, C)
    a = a - jnp.max(a, axis=-1, keepdims=True)
    a = jnp.exp(a)
    a = a / jnp.sum(a, axis=-1, keepdims=True)   # off-head entries -> exactly 0
    g_ref[...] = a                                # reuse scratch as block-diag attn

    # ---------- pass 2: value mix + output projection, per chunk ----------
    @pl.loop(0, n_chunks)
    def _(ci):
        xb = x_chunk(ci)                                                     # (cn, C)
        v = jnp.dot(xb, wv_ref[...], preferred_element_type=jnp.float32)     # (cn, C)
        attn = g_ref[...].astype(cdt)                                        # (C, C)
        # y = v @ attn^T without materializing a transpose: contract lane dims.
        y = lax.dot_general(v.astype(cdt), attn, (((1,), (1,)), ((), ())),
                            preferred_element_type=jnp.float32)              # (cn, C)
        out = jnp.dot(y.astype(cdt), wp_ref[...],
                      preferred_element_type=jnp.float32)                    # (cn, C)
        out = out + bp_ref[...]
        store_chunk(ci, out.astype(o_ref.dtype))


def _pick_chunk(n, target):
    """Return (chunk, n_chunks): chunk divides n, chunk % 8 == 0; else single chunk."""
    if n <= target:
        return n, 1
    for d in range(target, 7, -1):
        if n % d == 0 and d % 8 == 0:
            return d, n // d
    return n, 1  # fallback keeps slicing at full static extent


def xca_forward(x, w_qkv, temperature, w_proj, b_proj, *, num_heads,
                use_bf16=False, chunk_tokens=512):
    B, N, C = x.shape
    H = num_heads
    assert C % H == 0, "dim must be divisible by num_heads"
    assert w_qkv.shape == (3 * C, C)
    Ch = C // H

    chunk_n, n_chunks = _pick_chunk(N, chunk_tokens)
    cdt = jnp.bfloat16 if use_bf16 else x.dtype

    # Host-side parameter prep (done once): split the fused qkv weight and
    # pre-transpose everything to (in_features, out_features) so the kernel feeds
    # the MXU directly.  Bias / temperature / mask stay f32.
    wq_t = jnp.transpose(w_qkv[0 * C:1 * C, :]).astype(cdt)
    wk_t = jnp.transpose(w_qkv[1 * C:2 * C, :]).astype(cdt)
    wv_t = jnp.transpose(w_qkv[2 * C:3 * C, :]).astype(cdt)
    wp_t = jnp.transpose(w_proj).astype(cdt)
    bp = jnp.reshape(b_proj, (1, C)).astype(jnp.float32)

    # Per-query-channel temperature as a column vector (C, 1).
    temp_flat = jnp.reshape(temperature, (H,)).astype(jnp.float32)
    temp_col = jnp.reshape(jnp.repeat(temp_flat, Ch), (C, 1))

    # Block-diagonal additive mask: 0 where row and column belong to the same head,
    # a very negative value otherwise (exp -> 0 after softmax).
    head_id = jnp.arange(C, dtype=jnp.int32) // Ch
    mask = jnp.where(head_id[:, None] == head_id[None, :],
                     jnp.float32(0.0), jnp.float32(-1e30))

    x_c = x.astype(cdt)

    # Raise the scoped-VMEM limit only when the working set actually needs it.
    dtb = jnp.dtype(cdt).itemsize
    est = (4 * N * C * dtb                  # x + out blocks, double-buffered
           + 4 * C * C * dtb                # resident weights
           + 4 * C * C + 8 * C              # mask + bias + temperature (f32)
           + 4 * C * C + 8 * C              # gram + sum-of-squares scratch (f32)
           + 6 * chunk_n * C * 4)           # f32 per-chunk intermediates headroom
    vmem_limit = None
    if est > 24 * 1024 * 1024:
        cap = 64 * 1024 * 1024
        try:
            cap = int(getattr(pltpu.get_tpu_info(), "vmem_capacity_bytes", cap))
        except Exception:
            pass
        vmem_limit = int(min(max(est * 3 // 2, 32 * 1024 * 1024), int(cap * 0.9)))

    kernel = functools.partial(_xca_kernel, chunk_n=chunk_n, n_chunks=n_chunks)
    return pl.pallas_call(
        kernel,
        out_shape=jax.ShapeDtypeStruct((B, N, C), x.dtype),
        grid_spec=pltpu.PrefetchScalarGridSpec(
            num_scalar_prefetch=0,
            grid=(B,),
            in_specs=[
                pl.BlockSpec((1, N, C), lambda b: (b, 0, 0)),   # x
                pl.BlockSpec((C, C), lambda b: (0, 0)),         # wq_t (resident)
                pl.BlockSpec((C, C), lambda b: (0, 0)),         # wk_t (resident)
                pl.BlockSpec((C, C), lambda b: (0, 0)),         # wv_t (resident)
                pl.BlockSpec((C, C), lambda b: (0, 0)),         # wp_t (resident)
                pl.BlockSpec((1, C), lambda b: (0, 0)),         # proj bias
                pl.BlockSpec((C, 1), lambda b: (0, 0)),         # temperature column
                pl.BlockSpec((C, C), lambda b: (0, 0)),         # block-diag mask
            ],
            out_specs=pl.BlockSpec((1, N, C), lambda b: (b, 0, 0)),
            scratch_shapes=[
                pltpu.VMEM((C, 1), jnp.float32),                # q sum-of-squares (col)
                pltpu.VMEM((1, C), jnp.float32),                # k sum-of-squares (row)
                pltpu.VMEM((C, C), jnp.float32),                # gram / attention
            ],
        ),
        compiler_params=pltpu.CompilerParams(
            dimension_semantics=("parallel",),
            vmem_limit_bytes=vmem_limit,
        ),
    )(x_c, wq_t, wk_t, wv_t, wp_t, bp, temp_col, mask)


def xca_reference(x, w_qkv, temperature, w_proj, b_proj, *, num_heads):
    # Pure-JAX mirror of the PyTorch forward, for verification.
    B, N, C = x.shape
    H = num_heads
    Ch = C // H
    qkv = jnp.einsum("bnc,dc->bnd", x, w_qkv)                         # (B, N, 3C)
    qkv = qkv.reshape(B, N, 3, H, Ch).transpose(2, 0, 3, 1, 4)        # (3, B, H, N, Ch)
    q, k, v = qkv[0], qkv[1], qkv[2]
    q = jnp.swapaxes(q, -2, -1)                                       # (B, H, Ch, N)
    k = jnp.swapaxes(k, -2, -1)
    v = jnp.swapaxes(v, -2, -1)

    def l2n(t):
        n = jnp.maximum(jnp.sqrt(jnp.sum(t * t, axis=-1, keepdims=True)), 1e-12)
        return t / n

    q = l2n(q)
    k = l2n(k)
    attn = (q @ jnp.swapaxes(k, -2, -1)) * temperature[None, :, None, None]
    attn = jax.nn.softmax(attn, axis=-1)
    out = (attn @ v).transpose(0, 3, 1, 2).reshape(B, N, C)
    return out @ w_proj.T + jnp.reshape(b_proj, (1, C))


if __name__ == "__main__":
    B, N, C, H = 2, 16, 32, 8   # dim=32, num_heads=8 -> head_dim=4

    key = jax.random.PRNGKey(0)
    kx, kqkv, kproj, kbias = jax.random.split(key, 4)

    x = jax.random.normal(kx, (B, N, C), dtype=jnp.float32)
    # Deterministic synthetic parameters (qkv_bias=False, module default).
    w_qkv = jax.random.normal(kqkv, (3 * C, C), dtype=jnp.float32) * 0.05
    w_proj = jax.random.normal(kproj, (C, C), dtype=jnp.float32) * 0.05
    b_proj = jax.random.normal(kbias, (1, C), dtype=jnp.float32) * 0.05
    temperature = jnp.ones((H,), dtype=jnp.float32)   # nn.Parameter(torch.ones(H,1,1))

    ref = xca_reference(x, w_qkv, temperature, w_proj, b_proj, num_heads=H)

    # f32 path (single token chunk at these shapes).
    out = xca_forward(x, w_qkv, temperature, w_proj, b_proj, num_heads=H)
    out = jax.block_until_ready(out)
    assert out.shape == (B, N, C)
    assert jnp.allclose(out, ref, atol=1e-4, rtol=1e-4), "f32 mismatch vs reference"

    # f32 path with multiple token chunks (exercises the in-kernel accumulation).
    out_chunked = xca_forward(x, w_qkv, temperature, w_proj, b_proj,
                              num_heads=H, chunk_tokens=8)
    out_chunked = jax.block_until_ready(out_chunked)
    assert jnp.allclose(out_chunked, ref, atol=1e-4, rtol=1e-4), "chunked mismatch"

    # bf16-operand path (f32 accumulation / softmax) -- looser tolerance.
    out_bf16 = xca_forward(x, w_qkv, temperature, w_proj, b_proj,
                           num_heads=H, use_bf16=True)
    out_bf16 = jax.block_until_ready(out_bf16)
    assert out_bf16.dtype == jnp.float32
    assert jnp.allclose(out_bf16, ref, atol=5e-2, rtol=5e-2), "bf16 mismatch"

    print("KERNEL_OK")
</pallas_src>

<mosaic_0001>
module attributes {stable_mosaic.version = 11 : i64} {
  func.func @_xca_kernel(%arg0: i32, %arg1: memref<1x16x32xf32, #tpu.memory_space<vmem>>, %arg2: memref<32x32xf32, #tpu.memory_space<vmem>>, %arg3: memref<32x32xf32, #tpu.memory_space<vmem>>, %arg4: memref<32x32xf32, #tpu.memory_space<vmem>>, %arg5: memref<32x32xf32, #tpu.memory_space<vmem>>, %arg6: memref<1x32xf32, #tpu.memory_space<vmem>>, %arg7: memref<32x1xf32, #tpu.memory_space<vmem>>, %arg8: memref<32x32xf32, #tpu.memory_space<vmem>>, %arg9: memref<1x16x32xf32, #tpu.memory_space<vmem>>, %arg10: memref<32x1xf32, #tpu.memory_space<vmem>>, %arg11: memref<1x32xf32, #tpu.memory_space<vmem>>, %arg12: memref<32x32xf32, #tpu.memory_space<vmem>>) attributes {dimension_semantics = [#tpu.dimension_semantics<parallel>], iteration_bounds = array<i64: 2>, scalar_prefetch = 0 : i64, scratch_operands = 3 : i64, tpu.core_type = #tpu.core_type<tc>, window_params = [{transform_indices = @transform_0, window_bounds = array<i64: 1, 16, 32>}, {pipeline_mode = #tpu.pipeline_mode<synchronous>, transform_indices = @transform_1, window_bounds = array<i64: 32, 32>}, {pipeline_mode = #tpu.pipeline_mode<synchronous>, transform_indices = @transform_2, window_bounds = array<i64: 32, 32>}, {pipeline_mode = #tpu.pipeline_mode<synchronous>, transform_indices = @transform_3, window_bounds = array<i64: 32, 32>}, {pipeline_mode = #tpu.pipeline_mode<synchronous>, transform_indices = @transform_4, window_bounds = array<i64: 32, 32>}, {pipeline_mode = #tpu.pipeline_mode<synchronous>, transform_indices = @transform_5, window_bounds = array<i64: 1, 32>}, {pipeline_mode = #tpu.pipeline_mode<synchronous>, transform_indices = @transform_6, window_bounds = array<i64: 32, 1>}, {pipeline_mode = #tpu.pipeline_mode<synchronous>, transform_indices = @transform_7, window_bounds = array<i64: 32, 32>}, {transform_indices = @transform_8, window_bounds = array<i64: 1, 16, 32>}]} {
    %cst = arith.constant 0.000000e+00 : f32
    %0 = vector.broadcast %cst : f32 to vector<32x1xf32>
    %c0 = arith.constant 0 : index
    %c0_0 = arith.constant 0 : index
    %1 = vector.load %arg10[%c0, %c0_0] : memref<32x1xf32, #tpu.memory_space<vmem>>, vector<32x1xf32>
    tpu.vector_store %arg10[%c0, %c0_0], %0 {strides = array<i32>} : memref<32x1xf32, #tpu.memory_space<vmem>>, vector<32x1xf32>,
    %cst_1 = arith.constant 0.000000e+00 : f32
    %2 = vector.broadcast %cst_1 : f32 to vector<1x32xf32>
    %c0_2 = arith.constant 0 : index
    %c0_3 = arith.constant 0 : index
    %3 = vector.load %arg11[%c0_2, %c0_3] : memref<1x32xf32, #tpu.memory_space<vmem>>, vector<1x32xf32>
    tpu.vector_store %arg11[%c0_2, %c0_3], %2 {strides = array<i32>} : memref<1x32xf32, #tpu.memory_space<vmem>>, vector<1x32xf32>,
    %cst_4 = arith.constant 0.000000e+00 : f32
    %4 = vector.broadcast %cst_4 : f32 to vector<32x32xf32>
    %c0_5 = arith.constant 0 : index
    %c0_6 = arith.constant 0 : index
    %5 = vector.load %arg12[%c0_5, %c0_6] : memref<32x32xf32, #tpu.memory_space<vmem>>, vector<32x32xf32>
    tpu.vector_store %arg12[%c0_5, %c0_6], %4 {strides = array<i32>} : memref<32x32xf32, #tpu.memory_space<vmem>>, vector<32x32xf32>,
    %cst_7 = arith.constant 1.000000e+00 : f32
    %6 = vector.broadcast %cst_7 : f32 to vector<16x1xf32>
    %c0_i32 = arith.constant 0 : i32
    %c0_8 = arith.constant 0 : index
    %c0_9 = arith.constant 0 : index
    %c0_10 = arith.constant 0 : index
    %7 = vector.load %arg1[%c0_8, %c0_9, %c0_10] : memref<1x16x32xf32, #tpu.memory_space<vmem>>, vector<1x16x32xf32>
    %8 = vector.shape_cast %7 : vector<1x16x32xf32> to vector<16x32xf32>
    %c0_11 = arith.constant 0 : index
    %c0_12 = arith.constant 0 : index
    %9 = vector.load %arg2[%c0_11, %c0_12] : memref<32x32xf32, #tpu.memory_space<vmem>>, vector<32x32xf32>
    %cst_13 = arith.constant dense<0.000000e+00> : vector<16x32xf32>
    %10 = tpu.matmul %8, %9, %cst_13 {dimension_numbers = #tpu.dot_dimension_numbers<[1], [0], [0], [1], [0, 0, 1, 1], [], []>} : vector<16x32xf32>, vector<32x32xf32>, vector<16x32xf32> -> vector<16x32xf32>
    %c0_14 = arith.constant 0 : index
    %c0_15 = arith.constant 0 : index
    %11 = vector.load %arg3[%c0_14, %c0_15] : memref<32x32xf32, #tpu.memory_space<vmem>>, vector<32x32xf32>
    %cst_16 = arith.constant dense<0.000000e+00> : vector<16x32xf32>
    %12 = tpu.matmul %8, %11, %cst_16 {dimension_numbers = #tpu.dot_dimension_numbers<[1], [0], [0], [1], [0, 0, 1, 1], [], []>} : vector<16x32xf32>, vector<32x32xf32>, vector<16x32xf32> -> vector<16x32xf32>
    %c0_17 = arith.constant 0 : index
    %c0_18 = arith.constant 0 : index
    %13 = vector.load %arg10[%c0_17, %c0_18] : memref<32x1xf32, #tpu.memory_space<vmem>>, vector<32x1xf32>
    %14 = arith.mulf %10, %10 : vector<16x32xf32>
    %cst_19 = arith.constant dense<0.000000e+00> : vector<32x1xf32>
    %15 = tpu.matmul %14, %6, %cst_19 {dimension_numbers = #tpu.dot_dimension_numbers<[0], [0], [1], [1], [0, 1, 1, 1], [], []>} : vector<16x32xf32>, vector<16x1xf32>, vector<32x1xf32> -> vector<32x1xf32>
    %16 = arith.addf %13, %15 : vector<32x1xf32>
    %c0_20 = arith.constant 0 : index
    %c0_21 = arith.constant 0 : index
    %17 = vector.load %arg10[%c0_20, %c0_21] : memref<32x1xf32, #tpu.memory_space<vmem>>, vector<32x1xf32>
    tpu.vector_store %arg10[%c0_20, %c0_21], %16 {strides = array<i32>} : memref<32x1xf32, #tpu.memory_space<vmem>>, vector<32x1xf32>,
    %c0_22 = arith.constant 0 : index
    %c0_23 = arith.constant 0 : index
    %18 = vector.load %arg11[%c0_22, %c0_23] : memref<1x32xf32, #tpu.memory_space<vmem>>, vector<1x32xf32>
    %19 = arith.mulf %12, %12 : vector<16x32xf32>
    %cst_24 = arith.constant dense<0.000000e+00> : vector<32xf32>
    %20 = vector.multi_reduction <add>, %19, %cst_24 [0] : vector<16x32xf32> to vector<32xf32>
    %21 = vector.shape_cast %20 : vector<32xf32> to vector<1x32xf32>
    %22 = arith.addf %18, %21 : vector<1x32xf32>
    %c0_25 = arith.constant 0 : index
    %c0_26 = arith.constant 0 : index
    %23 = vector.load %arg11[%c0_25, %c0_26] : memref<1x32xf32, #tpu.memory_space<vmem>>, vector<1x32xf32>
    tpu.vector_store %arg11[%c0_25, %c0_26], %22 {strides = array<i32>} : memref<1x32xf32, #tpu.memory_space<vmem>>, vector<1x32xf32>,
    %c0_27 = arith.constant 0 : index
    %c0_28 = arith.constant 0 : index
    %24 = vector.load %arg12[%c0_27, %c0_28] : memref<32x32xf32, #tpu.memory_space<vmem>>, vector<32x32xf32>
    %cst_29 = arith.constant dense<0.000000e+00> : vector<32x32xf32>
    %25 = tpu.matmul %10, %12, %cst_29 {dimension_numbers = #tpu.dot_dimension_numbers<[0], [0], [1], [1], [0, 1, 1, 1], [], []>} : vector<16x32xf32>, vector<16x32xf32>, vector<32x32xf32> -> vector<32x32xf32>
    %26 = arith.addf %24, %25 : vector<32x32xf32>
    %c0_30 = arith.constant 0 : index
    %c0_31 = arith.constant 0 : index
    %27 = vector.load %arg12[%c0_30, %c0_31] : memref<32x32xf32, #tpu.memory_space<vmem>>, vector<32x32xf32>
    tpu.vector_store %arg12[%c0_30, %c0_31], %26 {strides = array<i32>} : memref<32x32xf32, #tpu.memory_space<vmem>>, vector<32x32xf32>,
    %c0_32 = arith.constant 0 : index
    %c0_33 = arith.constant 0 : index
    %28 = vector.load %arg10[%c0_32, %c0_33] : memref<32x1xf32, #tpu.memory_space<vmem>>, vector<32x1xf32>
    %cst_34 = arith.constant 1.000000e-24 : f32
    %29 = vector.broadcast %cst_34 : f32 to vector<32x1xf32>
    %30 = arith.maximumf %28, %29 : vector<32x1xf32>
    %31 = math.rsqrt %30 : vector<32x1xf32>
    %c0_35 = arith.constant 0 : index
    %c0_36 = arith.constant 0 : index
    %32 = vector.load %arg7[%c0_35, %c0_36] : memref<32x1xf32, #tpu.memory_space<vmem>>, vector<32x1xf32>
    %33 = arith.mulf %31, %32 : vector<32x1xf32>
    %c0_37 = arith.constant 0 : index
    %c0_38 = arith.constant 0 : index
    %34 = vector.load %arg11[%c0_37, %c0_38] : memref<1x32xf32, #tpu.memory_space<vmem>>, vector<1x32xf32>
    %cst_39 = arith.constant 1.000000e-24 : f32
    %35 = vector.broadcast %cst_39 : f32 to vector<1x32xf32>
    %36 = arith.maximumf %34, %35 : vector<1x32xf32>
    %37 = math.rsqrt %36 : vector<1x32xf32>
    %c0_40 = arith.constant 0 : index
    %c0_41 = arith.constant 0 : index
    %38 = vector.load %arg12[%c0_40, %c0_41] : memref<32x32xf32, #tpu.memory_space<vmem>>, vector<32x32xf32>
    %39 = vector.broadcast %33 : vector<32x1xf32> to vector<32x32xf32>
    %40 = arith.mulf %38, %39 : vector<32x32xf32>
    %41 = vector.broadcast %37 : vector<1x32xf32> to vector<32x32xf32>
    %42 = arith.mulf %40, %41 : vector<32x32xf32>
    %c0_42 = arith.constant 0 : index
    %c0_43 = arith.constant 0 : index
    %43 = vector.load %arg8[%c0_42, %c0_43] : memref<32x32xf32, #tpu.memory_space<vmem>>, vector<32x32xf32>
    %44 = arith.addf %42, %43 : vector<32x32xf32>
    %cst_44 = arith.constant dense<0xFF800000> : vector<32xf32>
    %45 = vector.multi_reduction <maximumf>, %44, %cst_44 [1] : vector<32x32xf32> to vector<32xf32>
    %46 = vector.shape_cast %45 : vector<32xf32> to vector<32x1xf32>
    %47 = vector.broadcast %46 : vector<32x1xf32> to vector<32x32xf32>
    %48 = arith.subf %44, %47 : vector<32x32xf32>
    %49 = math.exp %48 : vector<32x32xf32>
    %cst_45 = arith.constant dense<0.000000e+00> : vector<32xf32>
    %50 = vector.multi_reduction <add>, %49, %cst_45 [1] : vector<32x32xf32> to vector<32xf32>
    %51 = vector.shape_cast %50 : vector<32xf32> to vector<32x1xf32>
    %52 = vector.broadcast %51 : vector<32x1xf32> to vector<32x32xf32>
    %53 = arith.divf %49, %52 : vector<32x32xf32>
    %c0_46 = arith.constant 0 : index
    %c0_47 = arith.constant 0 : index
    %54 = vector.load %arg12[%c0_46, %c0_47] : memref<32x32xf32, #tpu.memory_space<vmem>>, vector<32x32xf32>
    tpu.vector_store %arg12[%c0_46, %c0_47], %53 {strides = array<i32>} : memref<32x32xf32, #tpu.memory_space<vmem>>, vector<32x32xf32>,
    %c0_i32_48 = arith.constant 0 : i32
    %c0_49 = arith.constant 0 : index
    %c0_50 = arith.constant 0 : index
    %c0_51 = arith.constant 0 : index
    %55 = vector.load %arg1[%c0_49, %c0_50, %c0_51] : memref<1x16x32xf32, #tpu.memory_space<vmem>>, vector<1x16x32xf32>
    %56 = vector.shape_cast %55 : vector<1x16x32xf32> to vector<16x32xf32>
    %c0_52 = arith.constant 0 : index
    %c0_53 = arith.constant 0 : index
    %57 = vector.load %arg4[%c0_52, %c0_53] : memref<32x32xf32, #tpu.memory_space<vmem>>, vector<32x32xf32>
    %cst_54 = arith.constant dense<0.000000e+00> : vector<16x32xf32>
    %58 = tpu.matmul %56, %57, %cst_54 {dimension_numbers = #tpu.dot_dimension_numbers<[1], [0], [0], [1], [0, 0, 1, 1], [], []>} : vector<16x32xf32>, vector<32x32xf32>, vector<16x32xf32> -> vector<16x32xf32>
    %c0_55 = arith.constant 0 : index
    %c0_56 = arith.constant 0 : index
    %59 = vector.load %arg12[%c0_55, %c0_56] : memref<32x32xf32, #tpu.memory_space<vmem>>, vector<32x32xf32>
    %cst_57 = arith.constant dense<0.000000e+00> : vector<16x32xf32>
    %60 = tpu.matmul %58, %59, %cst_57 {dimension_numbers = #tpu.dot_dimension_numbers<[1], [1], [0], [0], [0, 0, 1, 0], [], []>} : vector<16x32xf32>, vector<32x32xf32>, vector<16x32xf32> -> vector<16x32xf32>
    %c0_58 = arith.constant 0 : index
    %c0_59 = arith.constant 0 : index
    %61 = vector.load %arg5[%c0_58, %c0_59] : memref<32x32xf32, #tpu.memory_space<vmem>>, vector<32x32xf32>
    %cst_60 = arith.constant dense<0.000000e+00> : vector<16x32xf32>
    %62 = tpu.matmul %60, %61, %cst_60 {dimension_numbers = #tpu.dot_dimension_numbers<[1], [0], [0], [1], [0, 0, 1, 1], [], []>} : vector<16x32xf32>, vector<32x32xf32>, vector<16x32xf32> -> vector<16x32xf32>
    %c0_61 = arith.constant 0 : index
    %c0_62 = arith.constant 0 : index
    %63 = vector.load %arg6[%c0_61, %c0_62] : memref<1x32xf32, #tpu.memory_space<vmem>>, vector<1x32xf32>
    %64 = vector.broadcast %63 : vector<1x32xf32> to vector<16x32xf32>
    %65 = arith.addf %62, %64 : vector<16x32xf32>
    %c0_63 = arith.constant 0 : index
    %c0_64 = arith.constant 0 : index
    %c0_65 = arith.constant 0 : index
    %66 = vector.load %arg9[%c0_63, %c0_64, %c0_65] : memref<1x16x32xf32, #tpu.memory_space<vmem>>, vector<1x16x32xf32>
    %67 = vector.shape_cast %66 : vector<1x16x32xf32> to vector<16x32xf32>
    %68 = vector.shape_cast %65 : vector<16x32xf32> to vector<1x16x32xf32>
    tpu.vector_store %arg9[%c0_63, %c0_64, %c0_65], %68 {strides = array<i32>} : memref<1x16x32xf32, #tpu.memory_space<vmem>>, vector<1x16x32xf32>,
    return
  }
  func.func @transform_0(%arg0: i32) -> (i32, i32, i32) {
    %c0_i32 = arith.constant 0 : i32
    %c0_i32_0 = arith.constant 0 : i32
    %c0_i32_1 = arith.constant 0 : i32
    return %arg0, %c0_i32, %c0_i32_0 : i32, i32, i32
  }
  func.func @transform_1(%arg0: i32) -> (i32, i32) {
    %c0_i32 = arith.constant 0 : i32
    %c0_i32_0 = arith.constant 0 : i32
    %c0_i32_1 = arith.constant 0 : i32
    return %c0_i32, %c0_i32_0 : i32, i32
  }
  func.func @transform_2(%arg0: i32) -> (i32, i32) {
    %c0_i32 = arith.constant 0 : i32
    %c0_i32_0 = arith.constant 0 : i32
    %c0_i32_1 = arith.constant 0 : i32
    return %c0_i32, %c0_i32_0 : i32, i32
  }
  func.func @transform_3(%arg0: i32) -> (i32, i32) {
    %c0_i32 = arith.constant 0 : i32
    %c0_i32_0 = arith.constant 0 : i32
    %c0_i32_1 = arith.constant 0 : i32
    return %c0_i32, %c0_i32_0 : i32, i32
  }
  func.func @transform_4(%arg0: i32) -> (i32, i32) {
    %c0_i32 = arith.constant 0 : i32
    %c0_i32_0 = arith.constant 0 : i32
    %c0_i32_1 = arith.constant 0 : i32
    return %c0_i32, %c0_i32_0 : i32, i32
  }
  func.func @transform_5(%arg0: i32) -> (i32, i32) {
    %c0_i32 = arith.constant 0 : i32
    %c0_i32_0 = arith.constant 0 : i32
    %c0_i32_1 = arith.constant 0 : i32
    return %c0_i32, %c0_i32_0 : i32, i32
  }
  func.func @transform_6(%arg0: i32) -> (i32, i32) {
    %c0_i32 = arith.constant 0 : i32
    %c0_i32_0 = arith.constant 0 : i32
    %c0_i32_1 = arith.constant 0 : i32
    return %c0_i32, %c0_i32_0 : i32, i32
  }
  func.func @transform_7(%arg0: i32) -> (i32, i32) {
    %c0_i32 = arith.constant 0 : i32
    %c0_i32_0 = arith.constant 0 : i32
    %c0_i32_1 = arith.constant 0 : i32
    return %c0_i32, %c0_i32_0 : i32, i32
  }
  func.func @transform_8(%arg0: i32) -> (i32, i32, i32) {
    %c0_i32 = arith.constant 0 : i32
    %c0_i32_0 = arith.constant 0 : i32
    %c0_i32_1 = arith.constant 0 : i32
    return %arg0, %c0_i32, %c0_i32_0 : i32, i32, i32
  }
}

</mosaic_0001>

<bundles_post_ra>
// kernel: tpu_custom_call.1
= control target key start
LH: loop header
LB: loop body
LE: loop exit
PB: predicated region body
PF: predicated region fallthrough
CT: control target
= control target key end

     0   :  { %s2325_s0 = inlined_call_operand.vmem [shape: f32[2,16,32], index: 0, kind: input, shape index: {}]   ;;  %s2326_s1 = inlined_call_operand.hbm [shape: f32[32,32], index: 1, kind: input, shape index: {}]   ;;  %s2327_s2 = inlined_call_operand.hbm [shape: f32[32,32], index: 2, kind: input, shape index: {}]   ;;  %s2328_s3 = inlined_call_operand.hbm [shape: f32[32,32], index: 3, kind: input, shape index: {}]   ;;  %s2329_s4 = inlined_call_operand.hbm [shape: f32[32,32], index: 4, kind: input, shape index: {}]   ;;  %s2330_s5 = inlined_call_operand.vmem [shape: f32[1,32], index: 5, kind: input, shape index: {}]   ;;  %s2331_s6 = inlined_call_operand.vmem [shape: f32[32,1], index: 6, kind: input, shape index: {}]   ;;  %s2332_s7 = inlined_call_operand.hbm [shape: f32[32,32], index: 7, kind: input, shape index: {}]   ;;  %s2333_s8 = inlined_call_operand.hbm [shape: f32[2,16,32], index: 8, kind: output, shape index: {}]  }
   0x1   :  { %2341 = sst [smem:[#allocation23_spill]] %s2327_s2 }
   0x2   :  { %13 = vsyncpa [#allocation6], 0 }
   0x3   :  { %14 = vsyncpa [#allocation9], 0 }
   0x4   :  { %15 = vsyncpa [#allocation12], 0 }
   0x5   :  { %16 = vsyncpa [#allocation7], 0 }
   0x6   :  { %18 = vsyncpa [#allocation7 + $0x1], 0  ;;  %s1988_s27 = smov 0   ;;  %s1990_s28 = smov 0  }
   0x7   :  { %s1992_s29 = smov 0   ;;  %s1994_s30 = smov 0  }
   0x8 LB: > { %2342 = sst [smem:[#allocation19_spill]] %s1924_s29  ;;  %s2009_s9 = sadd.s32 4294967295, %s1928_s30   ;;  %s1928_s30 = sphi %s1994_s30, %s2362_s30   ;;  %s1924_s29 = sphi %s1992_s29, %s2364_s29   ;;  %s1920_s28 = sphi %s1990_s28, %s2366_s28   ;;  %s1916_s27 = sphi %s1988_s27, %s2365_s27  }
   0x9   : > { %s1375_s10 = sadd.s32 4294967294, %s1928_s30   ;;  %s2013_s11 = sadd.s32 1, %s1928_s30  }
   0xa   : > { %2343 = sst [smem:[#allocation20_spill]] %s2013_s11  ;;  %s204_s12 = sadd.s32 1, %s1924_s29 }
   0xb   : > { %s201_s13 = ssub.s32 %s1928_s30, %s2013_s11  ;;  %p214_p0 = scmp.ne.s32.totalorder %s1924_s29, %s1920_s28 }
   0xc   : > { %p202_p1 = scmp.eq.s32.totalorder %s201_s13, 0  ;;  %p215_p2 = scmp.eq.s32.totalorder %s2009_s9, 1 }
   0xd   : > { %p220_p3 = scmp.ne.s32.totalorder %s1920_s28, %s1916_s27  ;;  %p221_p4 = scmp.eq.s32.totalorder %s1375_s10, 1 }
   0xe   : > { %s2024_s14 = scalar_select %p202_p1, %s1924_s29, %s204_s12  }
   0xf   : > { %p2026_p5 = por %p215_p2, %p214_p0  ;;  %p2030_p6 = por %p221_p4, %p220_p3 }
  0x10   : > { %2344 = sst [smem:[#allocation21_spill]] %s2024_s14  ;;  %p1376_p7 = scmp.ge.s32.totalorder %s1928_s30, 1 }
  0x11   : > { %s2345_s15 = scalar_select %p2026_p5, 1, 0 }
  0x12   : > { %s2346_s16 = scalar_select %p2030_p6, 1, 0 }
  0x13   : > { %p228_p8 = scmp.lt.s32.totalorder %s1928_s30, 3  ;;  %p2334_p9 = scmp.eq.s32.totalorder %s2009_s9, 0 }
  0x14   : > { %2347 = sst [smem:[#allocation22_spill]] %s2346_s16  ;;  %s1930_s18 = smov [#allocation8]  }
  0x15   : > { %p2037_p10 = pnand %p1376_p7, %p228_p8  ;;  %s253_s19 = sshll.u32 %s1930_s18, 4  ;;  %s2043_s19 = int_to_ptr.vmem [resolvable:$true] %s253_s19 }
  0x16   : > { %s1931_s21 = smov [#allocation11]   ;;  %s1932_s23 = smov [#allocation5]  }
  0x17   : > { %s2348_s17 = scalar_select %p2037_p10, 1, 0 }
  0x18   : > { %p1611_p11 = pneg %p2037_p10  ;;  %s279_s22 = sshll.u32 %s1931_s21, 4  ;;  %s2051_s22 = int_to_ptr.vmem [resolvable:$true] %s279_s22 }
  0x19   : > { %s2053_s24 = sshll.u32 %s1932_s23, 4  ;;  %s2350_s2 = sld [smem:[#allocation23_spill]]  ;;  %s241_s24 = int_to_ptr.vmem [resolvable:$true] %s2053_s24 }
  0x1a   : > { %p2047_p12 = pnand %p2334_p9, %p1611_p11 }
  0x1c   : > { %p2063_p0 = pneg %p2047_p12 }
  0x1f   : > { %s1714_s10 = scalar_lea.hbm %s2350_s2, 512 }
  0x20   : > { %p1715_p13 = scmp.ne.s32.totalorder %s2350_s2, %s1714_s10  ;;  %p1721_p3 = scmp.lt.u32.totalorder %s1714_s10, %s2350_s2 }
  0x22   : > { %p1717_p1 = pnand %p2063_p0, %p1715_p13 }
  0x24   : > { %p1718_p2 = pneg %p1717_p1 }
  0x26   : > { %p1723_p4 = pnand %p1721_p3, %p1718_p2 }
  0x28   : > { %1726 = shalt.err (!%p1723_p4)
}
  0x29   : > { %s1727_s25 = scalar_lea.vmem %s2043_s19, 512  ;;  %p1735_p9 = scmp.lt.s32.totalorder %s2043_s19, %s2043_s19 }
  0x2a   : > { %p1728_p7 = scmp.ne.s32.totalorder %s2043_s19, %s1727_s25  ;;  %p1736_p6 = scmp.lt.s32.totalorder %s1727_s25, %s1727_s25 }
  0x2c   : > { %p1730_p8 = pnand %p1728_p7, %p2063_p0  ;;  %p1737_p13 = por %p1736_p6, %p1735_p9 }
  0x2e   : > { %p1731_p11 = pneg %p1730_p8 }
  0x30   : > { %p1738_p1 = pnand %p1737_p13, %p1731_p11 }
  0x32   : > { %1741 = shalt.err (!%p1738_p1)
}
  0x33   : > { %s1933_s26 = smov 128   ;;  %s1934_s10 = smov 8  }
  0x34   : > { %1617 = dma.hbm_to_vmem [thread:$0]  (!%p2047_p12), %s2350_s2, 512, %s2043_s19, [#allocation9], %s1933_s26, %s1933_s26, %s1934_s10  }
  0x35   : > { %s1742_s25 = scalar_lea.hbm %s2329_s4, 512 }
  0x36   : > { %p1743_p6 = scmp.ne.s32.totalorder %s2329_s4, %s1742_s25  ;;  %p1749_p3 = scmp.lt.u32.totalorder %s1742_s25, %s2329_s4 }
  0x38   : > { %p1745_p9 = pnand %p1743_p6, %p2063_p0 }
  0x3a   : > { %p1746_p2 = pneg %p1745_p9 }
  0x3c   : > { %p1751_p4 = pnand %p1749_p3, %p1746_p2 }
  0x3e   : > { %1754 = shalt.err (!%p1751_p4)
}
  0x3f   : > { %s1755_s19 = scalar_lea.vmem %s2051_s22, 512  ;;  %p1763_p13 = scmp.lt.s32.totalorder %s2051_s22, %s2051_s22 }
  0x40   : > { %p1756_p7 = scmp.ne.s32.totalorder %s2051_s22, %s1755_s19  ;;  %p1764_p1 = scmp.lt.s32.totalorder %s1755_s19, %s1755_s19 }
  0x42   : > { %p1758_p8 = pnand %p1756_p7, %p2063_p0  ;;  %p1765_p6 = por %p1764_p1, %p1763_p13 }
  0x44   : > { %p1759_p11 = pneg %p1758_p8 }
  0x46   : > { %p1766_p9 = pnand %p1765_p6, %p1759_p11 }
  0x48   : > { %1769 = shalt.err (!%p1766_p9)
}
  0x49   : > { %1623 = dma.hbm_to_vmem [thread:$0]  (!%p2047_p12), %s2329_s4, 512, %s2051_s22, [#allocation12], %s1933_s26, %s1933_s26, %s1934_s10  }
  0x4a   : > { %s1770_s12 = scalar_lea.hbm %s2326_s1, 512 }
  0x4b   : > { %p1771_p2 = scmp.ne.s32.totalorder %s2326_s1, %s1770_s12  ;;  %p1777_p7 = scmp.lt.u32.totalorder %s1770_s12, %s2326_s1 }
  0x4d   : > { %p1773_p3 = pnand %p1771_p2, %p2063_p0 }
  0x4f   : > { %p1774_p4 = pneg %p1773_p3 }
  0x51   : > { %p1779_p8 = pnand %p1777_p7, %p1774_p4 }
  0x53   : > { %1782 = shalt.err (!%p1779_p8)
}
  0x54   : > { %s1783_s19 = scalar_lea.vmem %s241_s24, 512  ;;  %p1791_p6 = scmp.lt.s32.totalorder %s241_s24, %s241_s24 }
  0x55   : > { %p1784_p11 = scmp.ne.s32.totalorder %s241_s24, %s1783_s19  ;;  %p1792_p9 = scmp.lt.s32.totalorder %s1783_s19, %s1783_s19 }
  0x57   : > { %p1786_p13 = pnand %p1784_p11, %p2063_p0  ;;  %p1793_p5 = por %p1792_p9, %p1791_p6 }
  0x59   : > { %p1787_p1 = pneg %p1786_p13 }
  0x5b   : > { %p1794_p10 = pnand %p1793_p5, %p1787_p1 }
  0x5d   : > { %1797 = shalt.err (!%p1794_p10)
}
  0x5e   : > { %1614 = dma.hbm_to_vmem [thread:$0]  (!%p2047_p12), %s2326_s1, 512, %s241_s24, [#allocation6], %s1933_s26, %s1933_s26, %s1934_s10  }
  0x5f   : > { %s1935_s11 = smov [#allocation10]   ;;  %s1936_s16 = smov [#allocation13]  }
  0x60   : > { %s266_s14 = sshll.u32 %s1935_s11, 4  ;;  %s298_s12 = sshll.u32 %s1936_s16, 4  ;;  %s267_s14 = int_to_ptr.vmem [resolvable:$true] %s266_s14  ;;  %s299_s12 = int_to_ptr.vmem [resolvable:$true] %s298_s12 }
  0x61   : > { %s1798_s23 = scalar_lea.hbm %s2328_s3, 512 }
  0x62   : > { %p1799_p5 = scmp.ne.s32.totalorder %s2328_s3, %s1798_s23  ;;  %p1805_p3 = scmp.lt.u32.totalorder %s1798_s23, %s2328_s3 }
  0x64   : > { %p1801_p10 = pnand %p1799_p5, %p2063_p0 }
  0x66   : > { %p1802_p2 = pneg %p1801_p10 }
  0x68   : > { %p1807_p4 = pnand %p1805_p3, %p1802_p2 }
  0x6a   : > { %1810 = shalt.err (!%p1807_p4)
}
  0x6b   : > { %s1811_s24 = scalar_lea.vmem %s267_s14, 512  ;;  %p1819_p13 = scmp.lt.s32.totalorder %s267_s14, %s267_s14 }
  0x6c   : > { %p1812_p7 = scmp.ne.s32.totalorder %s267_s14, %s1811_s24  ;;  %p1820_p1 = scmp.lt.s32.totalorder %s1811_s24, %s1811_s24 }
  0x6e   : > { %p1814_p8 = pnand %p1812_p7, %p2063_p0  ;;  %p1821_p6 = por %p1820_p1, %p1819_p13 }
  0x70   : > { %p1815_p11 = pneg %p1814_p8 }
  0x72   : > { %p1822_p9 = pnand %p1821_p6, %p1815_p11 }
  0x74   : > { %1825 = shalt.err (!%p1822_p9)
}
  0x75   : > { %1620 = dma.hbm_to_vmem [thread:$0]  (!%p2047_p12), %s2328_s3, 512, %s267_s14, [#allocation9], %s1933_s26, %s1933_s26, %s1934_s10  }
  0x76   : > { %s1826_s13 = scalar_lea.hbm %s2332_s7, 512 }
  0x77   : > { %p1827_p5 = scmp.ne.s32.totalorder %s2332_s7, %s1826_s13  ;;  %p1833_p3 = scmp.lt.u32.totalorder %s1826_s13, %s2332_s7 }
  0x79   : > { %p1829_p10 = pnand %p1827_p5, %p2063_p0 }
  0x7b   : > { %p1830_p2 = pneg %p1829_p10 }
  0x7d   : > { %p1835_p4 = pnand %p1833_p3, %p1830_p2 }
  0x7f   : > { %1838 = shalt.err (!%p1835_p4)
}
  0x80   : > { %s1839_s22 = scalar_lea.vmem %s299_s12, 512  ;;  %p1847_p13 = scmp.lt.s32.totalorder %s299_s12, %s299_s12 }
  0x81   : > { %p1840_p7 = scmp.ne.s32.totalorder %s299_s12, %s1839_s22  ;;  %p1848_p1 = scmp.lt.s32.totalorder %s1839_s22, %s1839_s22 }
  0x83   : > { %p1842_p8 = pnand %p1840_p7, %p2063_p0  ;;  %p1849_p6 = por %p1848_p1, %p1847_p13 }
  0x85   : > { %p1843_p11 = pneg %p1842_p8 }
  0x87   : > { %p1850_p9 = pnand %p1849_p6, %p1843_p11 }
  0x89   : > { %1853 = shalt.err (!%p1850_p9)
}
  0x8a   : > { %1626 = dma.hbm_to_vmem [thread:$0]  (!%p2047_p12), %s2332_s7, 512, %s299_s12, [#allocation12], %s1933_s26, %s1933_s26, %s1934_s10  }
  0x8b   : > { %p2352_p5 = scmp.ne.s32.totalorder %s2348_s17, 0 }
  0x8c   : > { %p2353_p0 = scmp.eq.s32.totalorder (!%p2352_p5), %s2009_s9, 0 }
  0x8d   : > { %322 = sbr.rel (%p2352_p5) target bundleno = 1674 (0x68a), region = 52 }
  0x94   : > { %1899 = dma.done.wait (%p2353_p0), [#allocation6], 512   ;;  %p2354_p10 = pmov %p2353_p0 }
  0x95   : > { %p2355_p2 = pmov %p2353_p0 }
  0x96   : > { %1901 = vsyncadd (%p2354_p10), [#allocation6], 4294966784 }
  0x97   : > { %1903 = dma.done.wait (%p2355_p2), [#allocation9], 1024   ;;  %p2356_p3 = pmov %p2353_p0 }
  0x98   : > { %p2357_p4 = pmov %p2353_p0 }
  0x99   : > { %1905 = vsyncadd (%p2356_p3), [#allocation9], 4294966272 }
  0x9a   : > { %1907 = dma.done.wait (%p2357_p4), [#allocation12], 1024   ;;  %p2358_p12 = pmov %p2353_p0 }
  0x9b   : > { %p372_p7 = scmp.lt.s32.totalorder %s2009_s9, 1  ;;  %vm384_vm0 = vcmask 261120   ;;  %v391_v0 = vld [vmem:[#allocation5] sm:$0xff]  ;;  %v392_v1 = vld [vmem:[#allocation5 + $0x8] sm:$0xff]  ;;  %v393_v2 = vld [vmem:[#allocation5 + $0x10] sm:$0xff]  ;;  %vm382_vm1 = vcmask 253952  }
  0x9c   : > { %1909 = vsyncadd (%p2358_p12), [#allocation12], 4294966272  ;;  %v1539_v3 = vpack.c.bf16 %v392_v1, %v391_v0  ;;  %v394_v4 = vld [vmem:[#allocation5 + $0x18] sm:$0xff]  ;;  %v476_v8 = vld [vmem:[#allocation8] sm:$0xff]  ;;  %v1937_v17 = vmov 1.0|1.0  }
  0x9d   : > { %s373_s17 = scalar_select %p372_p7, %s2009_s9, 1  ;;  %v1543_v6 = vpack.c.bf16 %v394_v4, %v393_v2  ;;  %v477_v9 = vld [vmem:[#allocation8 + $0x8] sm:$0xff]  ;;  %v478_v10 = vld [vmem:[#allocation8 + $0x10] sm:$0xff]  ;;  %v479_v12 = vld [vmem:[#allocation8 + $0x18] sm:$0xff]  ;;  %vm377_vm2 = vcmask 7168   ;;  %v1938_v19 = vmov 0.0  }
  0x9e   : > { %1540 = vmatprep.subr.bf16.mxu0 %v1539_v3  ;;  %v1547_v11 = vpack.c.bf16 %v477_v9, %v476_v8  ;;  %v1551_v13 = vpack.c.bf16 %v479_v12, %v478_v10  ;;  %383 = vst.msk [vmem:[#allocation3] sm:$0x1] %vm382_vm1, %v1938_v19  ;;  %vm593_vm3 = vcmask 130048   ;;  %v1939_v44 = vmov 0   ;;  %vm1570_vm4 = vmpackc.low %vm384_vm0, %vm384_vm0  ;;  %s369_s25 = sand.u32 1, %s1920_s28   ;;  %p2359_p11 = scmp.ne.s32.totalorder %s2345_s15, 0 }
  0x9f   : > { %s1420_s20 = sshll.u32 %s373_s17, 4  ;;  %1542 = vmatpush3.bf16.msra.mxu0 %v1539_v3  ;;  %385 = vst.msk [vmem:[#allocation4] sm:$0xff] %vm384_vm0, %v1938_v19  ;;  %386 = vst.msk [vmem:[#allocation4 + $0x8] sm:$0xff] %vm384_vm0, %v1938_v19  ;;  %s1389_s19 = sshll.u32 %s369_s25, 4 }
  0xa0   : > { %s376_s10 = scalar_lea.vmem %s2325_s0, %s1420_s20  ;;  %1544 = vmatprep.subr.bf16.mxu0 %v1543_v6  ;;  %1548 = vmatprep.subr.bf16.mxu1 %v1547_v11  ;;  %387 = vst.msk [vmem:[#allocation4 + $0x10] sm:$0xff] %vm384_vm0, %v1938_v19  ;;  %388 = vst.msk [vmem:[#allocation4 + $0x18] sm:$0xff] %vm384_vm0, %v1938_v19  ;;  %s371_s24 = scalar_lea.vmem [#allocation14], %s1389_s19 }
  0xa1   : > { %v2196_v5 = vld [vmem:[%s376_s10] sm:$0xff]  ;;  %v2202_v7 = vld [vmem:[%s376_s10 + $0x8] sm:$0xff]  ;;  %1550 = vmatpush3.bf16.msra.mxu1 %v1547_v11  ;;  %379 = vst.msk [vmem:[#allocation2 + $0x8] sm:$0xff] %vm377_vm2, %v1938_v19  ;;  %378 = vst.msk [vmem:[#allocation2] sm:$0xff] %vm377_vm2, %v1938_v19  ;;  %s1263_s17 = sshll.u32 %s371_s24, 4  ;;  %s1421_s20 = sshll.u32 %s2009_s9, 8  ;;  %s2275_s17 = int_to_ptr.vmem [resolvable:$true] %s1263_s17 }
  0xa2   : > { %1472 = vmatprep.mubr.msk.f32.mxu0 %vm384_vm0, %v2196_v5  ;;  %1483 = vmatprep.mubr.msk.f32.mxu1 %vm384_vm0, %v2196_v5  ;;  %380 = vst.msk [vmem:[#allocation2 + $0x10] sm:$0xff] %vm377_vm2, %v1938_v19  ;;  %381 = vst.msk [vmem:[#allocation2 + $0x18] sm:$0xff] %vm377_vm2, %v1938_v19  ;;  %s2280_s10 = scalar_lea.hbm %s2333_s8, %s1421_s20  ;;  %s2284_s12 = scalar_lea.sflag [#allocation7], %s369_s25 }
  0xa3   : > { %1546 = vmatpush3.bf16.msra.mxu0 %v1543_v6  ;;  %1552 = vmatprep.subr.bf16.mxu1 %v1551_v13  ;;  %s1854_s9 = scalar_lea.vmem %s2275_s17, 256  ;;  %s1940_s2 = smov [#allocation14]  }
  0xa4   : > { %1555 = vmatprep.subr.bf16.mxu0 %v1937_v17  ;;  %p1855_p8 = scmp.ne.s32.totalorder %s2275_s17, %s1854_s9  ;;  %s1858_s29 = sshll.u32 %s1940_s2, 4  ;;  %s1859_s29 = int_to_ptr.vmem [resolvable:$false] %s1858_s29 }
  0xa5   : > { %1554 = vmatpush3.bf16.msra.mxu1 %v1551_v13  ;;  %v699_v33 = vld [vmem:[#allocation3] sm:$0x1]  ;;  %s1860_s11 = scalar_lea.vmem %s1859_s29, 512  ;;  %p1861_p6 = scmp.lt.s32.totalorder %s2275_s17, %s1859_s29 }
  0xa6   : > { %1473 = vmatmul.mubr.msk.f32.vlgmr.msra.gmra.mrb[0].mxu0 %vm384_vm0, %v2202_v7  ;;  %v714_v45 = vld [vmem:[#allocation4 + $0x8] sm:$0xff]  ;;  %v713_v46 = vld [vmem:[#allocation4] sm:$0xff]  ;;  %p1856_p13 = pnand %p1855_p8, %p2359_p11  ;;  %p1862_p9 = scmp.lt.s32.totalorder %s1860_s11, %s1854_s9 }
  0xa7   : > { %1556 = vmatpush3.bf16.msra.mxu0 %v1937_v17  ;;  %v716_v57 = vld [vmem:[#allocation4 + $0x18] sm:$0xff]  ;;  %v715_v58 = vld [vmem:[#allocation4 + $0x10] sm:$0xff] }
  0xa8   : > { %1484 = vmatmul.mubr.msk.f32.vlgmr.msra.gmra.mrb[0].mxu1 %vm384_vm0, %v2202_v7  ;;  %v556_v47 = vld [vmem:[#allocation2 + $0x8] sm:$0xff]  ;;  %v555_v49 = vld [vmem:[#allocation2] sm:$0xff]  ;;  %p1857_p1 = pneg %p1856_p13  ;;  %p1863_p5 = por %p1862_p9, %p1861_p6 }
  0xa9   : > { %v558_v59 = vld [vmem:[#allocation2 + $0x18] sm:$0xff]  ;;  %v557_v61 = vld [vmem:[#allocation2 + $0x10] sm:$0xff] }
  0xaa   : > { %p1864_p0 = pnand %p1863_p5, %p1857_p1 }
 0x179   : > { %v1474_v14 = vpop.f32.mrb[0].mxu0 }
 0x17a   : > { %v467_v15 = vpop.f32.mrb[1].mxu0  ;;  %v560_v18 = vmul.f32 %v1474_v14, %v1474_v14 }
 0x17b   : > { %717 = vxpose.xlu1.b32.start [1/2] (short) (narrow) %v467_v15, 32  ;;  %v559_v16 = vmul.f32 %v467_v15, %v467_v15  ;;  %v1485_v20 = vpop.f32.mrb[0].mxu1  ;;  %v866_v15 = vld [vmem:[%s2331_s6] sm:$0xff] }
 0x17c   : > { %v701_v21 = vmul.f32 %v1485_v20, %v1485_v20  ;;  %v546_v22 = vpop.f32.mrb[1].mxu1 }
 0x17d   : > { %561 = vxpose.xlu0.b32.start [1/2] (short) (narrow) %v559_v16, 32  ;;  %v700_v23 = vmul.f32 %v546_v22, %v546_v22  ;;  %v1557_v24 = vpack.c.bf16 %v1485_v20, %v546_v22  ;;  %v868_v20 = vld [vmem:[%s2331_s6 + $0x10] sm:$0xff] }
 0x17e   : > { %v703_v25 = vsel %vm384_vm0, %v701_v21, 0.0 }
 0x17f   : > { %718 = vxpose.xlu1.b32.end [2/2] (short) (narrow) %v1474_v14, 32  ;;  %v702_v26 = vsel %vm384_vm0, %v700_v23, 0.0  ;;  %1558 = vmatprep.subr.bf16.mxu1 %v1557_v24  ;;  %v867_v14 = vld [vmem:[%s2331_s6 + $0x8] sm:$0xff] }
 0x180   : > { %v704_v27 = vadd.f32 %v703_v25, %v702_v26  ;;  %1560 = vmatpush3.bf16.msra.mxu1 %v1557_v24  ;;  %v869_v24 = vld [vmem:[%s2331_s6 + $0x18] sm:$0xff]  ;;  %v973_v26 = vld [vmem:[#allocation10] sm:$0xff] }
 0x181   : > { %562 = vxpose.xlu0.b32.end [2/2] (short) (narrow) %v560_v18, 32 }
 0x182   : > { %v705_v28 = vrot.slane %v704_v27, 4 }
 0x184   : > { %v706_v29 = vadd.f32 %v705_v28, %v704_v27  ;;  %v974_v27 = vld [vmem:[#allocation10 + $0x8] sm:$0xff]  ;;  %v975_v28 = vld [vmem:[#allocation10 + $0x10] sm:$0xff] }
 0x186   : > { %v707_v30 = vrot.slane %v706_v29, 2 }
 0x188   : > { %v708_v31 = vadd.f32 %v707_v30, %v706_v29  ;;  %v1561_v29 = vpack.c.bf16 %v974_v27, %v973_v26  ;;  %v976_v30 = vld [vmem:[#allocation10 + $0x18] sm:$0xff]  ;;  %v1156_v26 = vld [vmem:[#allocation11 + $0x8] sm:$0xff]  ;;  %v1157_v27 = vld [vmem:[#allocation11 + $0x10] sm:$0xff] }
 0x18a   : > { %v709_v32 = vrot.slane %v708_v31, 1  ;;  %1562 = vmatprep.subr.bf16.mxu0 %v1561_v29 }
 0x18c   : > { %v710_v34 = vadd.f32 %v709_v32, %v708_v31  ;;  %v1565_v31 = vpack.c.bf16 %v976_v30, %v975_v28 }
 0x18e   : > { %v711_v35 = vadd.f32 %v710_v34, %v699_v33  ;;  %v906_v34 = vlaneseq }
 0x190   : > { %712 = vst.msk [vmem:[#allocation3] sm:$0x1] %vm382_vm1, %v711_v35  ;;  %v907_v35 = vshrl.u32 %v906_v34, 7 }
 0x197   : > { %v874_v32 = vld [vmem:[#allocation3] sm:$0x1] }
 0x198   : > { %v875_v33 = vmax.f32 %v874_v32, 1e-24 }
 0x19d   : > { %1687 = vset.pattern.permute.xlu1 %v1939_v44 }
 0x1aa   : > { %1686 = vset.pattern.permute.xlu0 %v1939_v44 }
 0x1fb   : > { %v733_v36 = vpop.trf.xlu1 }
 0x1fc   : > { %1500 = vmatprep.mubr.msk.f32.mxu1 %vm593_vm3, %v733_v36  ;;  %v908_v36 = vsub.s32 0, %v907_v35 }
 0x1fd   : > { %v577_v37 = vpop.trf.xlu0 }
 0x1fe   : > { %1490 = vmatprep.mubr.msk.f32.mxu0 %vm593_vm3, %v577_v37 }
 0x1ff   : > { %v734_v38 = vpop.trf.xlu1 }
 0x200   : > { %1501 = vmatmul.mubr.msk.f32.vlgmr.msra.gmra.mrb[2].mxu1 %vm593_vm3, %v734_v38 }
 0x201   : > { %v578_v39 = vpop.trf.xlu0 }
 0x202   : > { %1491 = vmatmul.mubr.msk.f32.vlgmr.msra.gmra.mrb[2].mxu0 %vm593_vm3, %v578_v39 }
 0x203   : > { %v735_v40 = vpop.trf.xlu1  ;;  %1564 = vmatpush3.bf16.msra.mxu0 %v1561_v29  ;;  %v1158_v29 = vld [vmem:[#allocation11 + $0x18] sm:$0xff] }
 0x204   : > { %1503 = vmatprep.mubr.msk.f32.mxu1 %vm593_vm3, %v735_v40  ;;  %1566 = vmatprep.subr.bf16.mxu0 %v1565_v31  ;;  %v1585_v30 = vpack.c.bf16 %v1158_v29, %v1157_v27 }
 0x205   : > { %v579_v41 = vpop.trf.xlu0 }
 0x206   : > { %1493 = vmatprep.mubr.msk.f32.mxu0 %vm593_vm3, %v579_v41 }
 0x207   : > { %v736_v42 = vpop.trf.xlu1  ;;  %1568 = vmatpush3.bf16.msra.mxu0 %v1565_v31 }
 0x208   : > { %1504 = vmatmul.mubr.msk.f32.gmra.mrb[4].mxu1 %vm593_vm3, %v736_v42 }
 0x209   : > { %v580_v43 = vpop.trf.xlu0 }
 0x20a   : > { %1494 = vmatmul.mubr.msk.f32.gmra.mrb[4].mxu0 %vm593_vm3, %v580_v43 }
 0x20b   : > { %1514 = vmatprep.mubr.msk.f32.mxu0 %vm384_vm0, %v2196_v5 }
 0x20e   : > { %1515 = vmatmul.mubr.msk.f32.vlgmr.msra.gmra.mrb[6].mxu0 %vm384_vm0, %v2202_v7 }
 0x2d3   : > { %v1502_v48 = vpop.f32.mrb[2].mxu1 }
 0x2d4   : > { %v847_v50 = vadd.f32 %v1502_v48, %v714_v45  ;;  %v827_v51 = vpop.f32.mrb[3].mxu1  ;;  %v916_v45 = vld [vmem:[#allocation13 + $0x8] sm:$0xff] }
 0x2d5   : > { %v1492_v52 = vpop.f32.mrb[2].mxu0  ;;  %v846_v53 = vadd.f32 %v827_v51, %v713_v46 }
 0x2d6   : > { %v692_v54 = vadd.f32 %v1492_v52, %v556_v47  ;;  %v672_v55 = vpop.f32.mrb[3].mxu0  ;;  %851 = vst.msk [vmem:[#allocation4 + $0x8] sm:$0xff] %vm384_vm0, %v847_v50  ;;  %v915_v47 = vld [vmem:[#allocation13] sm:$0xff] }
 0x2d7   : > { %v691_v56 = vadd.f32 %v672_v55, %v555_v49  ;;  %850 = vst.msk [vmem:[#allocation4] sm:$0xff] %vm384_vm0, %v846_v53 }
 0x2d8   : > { %696 = vst.msk [vmem:[#allocation2 + $0x8] sm:$0xff] %vm377_vm2, %v692_v54 }
 0x2d9   : > { %695 = vst.msk [vmem:[#allocation2] sm:$0xff] %vm377_vm2, %v691_v56  ;;  %v917_v56 = vld [vmem:[#allocation13 + $0x10] sm:$0xff] }
 0x2db   : > { %v1505_v60 = vpop.f32.mrb[4].mxu1 }
 0x2dc   : > { %v849_v62 = vadd.f32 %v1505_v60, %v716_v57  ;;  %v837_v63 = vpop.f32.mrb[5].mxu1 }
 0x2dd   : > { %v1495_v0 = vpop.f32.mrb[4].mxu0  ;;  %v848_v1 = vadd.f32 %v837_v63, %v715_v58  ;;  %v878_v38 = vld [vmem:[#allocation4 + $0x8] sm:$0xff] }
 0x2de   : > { %v694_v2 = vadd.f32 %v1495_v0, %v558_v59  ;;  %v682_v3 = vpop.f32.mrb[5].mxu0  ;;  %853 = vst.msk [vmem:[#allocation4 + $0x18] sm:$0xff] %vm384_vm0, %v849_v62  ;;  %v877_v39 = vld [vmem:[#allocation4] sm:$0xff] }
 0x2df   : > { %v693_v4 = vadd.f32 %v682_v3, %v557_v61  ;;  %v855_v5 = vld [vmem:[#allocation2 + $0x8] sm:$0xff]  ;;  %852 = vst.msk [vmem:[#allocation4 + $0x10] sm:$0xff] %vm384_vm0, %v848_v1  ;;  %v918_v61 = vld [vmem:[#allocation13 + $0x18] sm:$0xff] }
 0x2e0   : > { %698 = vst.msk [vmem:[#allocation2 + $0x18] sm:$0xff] %vm377_vm2, %v694_v2  ;;  %v859_v6 = vmax.f32 %v855_v5, 1e-24  ;;  %v854_v8 = vld [vmem:[#allocation2] sm:$0xff] }
 0x2e1   : > { %697 = vst.msk [vmem:[#allocation2 + $0x10] sm:$0xff] %vm377_vm2, %v693_v4  ;;  %v858_v9 = vmax.f32 %v854_v8, 1e-24 }
 0x2e2   : > { %1688 = vrsqrt.f32 %v859_v6 }
 0x2e3   : > { %1690 = vrsqrt.f32 %v858_v9 }
 0x2e5   : > { %v880_v55 = vld [vmem:[#allocation4 + $0x18] sm:$0xff] }
 0x2e6   : > { %v879_v51 = vld [vmem:[#allocation4 + $0x10] sm:$0xff] }
 0x2e7   : > { %v857_v10 = vld [vmem:[#allocation2 + $0x18] sm:$0xff] }
 0x2e8   : > { %v856_v11 = vld [vmem:[#allocation2 + $0x10] sm:$0xff]  ;;  %v861_v13 = vmax.f32 %v857_v10, 1e-24 }
 0x2e9   : > { %v860_v12 = vmax.f32 %v856_v11, 1e-24 }
 0x2eb   : > { %1692 = vrsqrt.f32 %v860_v12 }
 0x2ec   : > { %v1689_v16 = vpop.eup %1688  ;;  %1694 = vrsqrt.f32 %v861_v13 }
 0x2ed   : > { %v1691_v17 = vpop.eup %1690  ;;  %v871_v18 = vmul.f32 %v1689_v16, %v867_v14  ;;  %1696 = vrsqrt.f32 %v875_v33 }
 0x2ee   : > { %v870_v19 = vmul.f32 %v1691_v17, %v866_v15 }
 0x2ef   : > { %888 = vperm.xlu1 %1687, %v871_v18  }
 0x2f0   : > { %883 = vperm.xlu0 %1686, %v870_v19  }
 0x2f5   : > { %v1693_v21 = vpop.eup %1692 }
 0x2f6   : > { %v872_v22 = vmul.f32 %v1693_v21, %v868_v20  ;;  %v1695_v23 = vpop.eup %1694 }
 0x2f7   : > { %v873_v25 = vmul.f32 %v1695_v23, %v869_v24  ;;  %v1697_v37 = vpop.eup %1696  ;;  %v1516_v23 = vpop.f32.mrb[6].mxu0 }
 0x2f8   : > { %893 = vperm.xlu1 %1687, %v872_v22   ;;  %v909_v41 = vrot.slane %v1697_v37, %v908_v36  ;;  %v1049_v24 = vpop.f32.mrb[7].mxu0 }
 0x2f9   : > { %1525 = vmatprep.mubr.msk.f32.mxu1 %vm384_vm0, %v1049_v24 }
 0x2fc   : > { %898 = vperm.xlu1 %1687, %v873_v25   ;;  %v1155_v25 = vld [vmem:[#allocation11] sm:$0xff] }
 0x2fd   : > { %v1581_v28 = vpack.c.bf16 %v1156_v26, %v1155_v25 }
 0x2ff   : > { %1582 = vmatprep.subr.bf16.mxu0 %v1581_v28 }
 0x300   : > { %1584 = vmatpush3.bf16.msra.mxu0 %v1581_v28 }
 0x301   : > { %1586 = vmatprep.subr.bf16.mxu0 %v1585_v30 }
 0x304   : > { %1588 = vmatpush3.bf16.msra.mxu0 %v1585_v30 }
 0x36e   : > { %v889_v40 = vpop.permute.xlu1 %888 }
 0x36f   : > { %v902_v42 = vmul.f32 %v889_v40, %v878_v38  ;;  %v884_v43 = vpop.permute.xlu0 %883 }
 0x370   : > { %v901_v44 = vmul.f32 %v884_v43, %v877_v39 }
 0x371   : > { %v912_v46 = vmul.f32 %v909_v41, %v902_v42 }
 0x372   : > { %v911_v48 = vmul.f32 %v909_v41, %v901_v44 }
 0x373   : > { %v920_v49 = vadd.f32 %v916_v45, %v912_v46 }
 0x374   : > { %v919_v7 = vadd.f32 %v915_v47, %v911_v48 }
 0x375   : > { %v926_v50 = vsel %vm384_vm0, %v920_v49, -inf }
 0x376   : > { %927 = vmax.xlane.f32.xlu0 %v926_v50  ;;  %v923_v52 = vsel %vm384_vm0, %v919_v7, -inf  ;;  %v1412_v50 = vld [vmem:[%s2330_s5] ss:$0 sm:$0xff] }
 0x377   : > { %v894_v53 = vpop.permute.xlu1 %893  ;;  %924 = vmax.xlane.f32.xlu1 %v923_v52 }
 0x378   : > { %v903_v54 = vmul.f32 %v894_v53, %v879_v51 }
 0x37a   : > { %v913_v57 = vmul.f32 %v909_v41, %v903_v54 }
 0x37b   : > { %v899_v58 = vpop.permute.xlu1 %898 }
 0x37c   : > { %v904_v59 = vmul.f32 %v899_v58, %v880_v55  ;;  %v921_v60 = vadd.f32 %v917_v56, %v913_v57 }
 0x37e   : > { %v914_v62 = vmul.f32 %v909_v41, %v904_v59  ;;  %v929_v63 = vsel %vm384_vm0, %v921_v60, -inf }
 0x37f   : > { %930 = vmax.xlane.f32.xlu0 %v929_v63 }
 0x380   : > { %v922_v0 = vadd.f32 %v918_v61, %v914_v62 }
 0x382   : > { %v932_v1 = vsel %vm384_vm0, %v922_v0, -inf }
 0x383   : > { %933 = vmax.xlane.f32.xlu1 %v932_v1 }
 0x403   : > { %v928_v2 = vpop.xlane.xlu0 %927 }
 0x404   : > { %v936_v3 = vsub.f32 %v920_v49, %v928_v2  ;;  %v925_v4 = vpop.xlane.xlu1 %924 }
 0x405   : > { %v935_v5 = vsub.f32 %v919_v7, %v925_v4 }
 0x406   : > { %v941_v6 = vmul.f32 1.442695, %v936_v3 }
 0x407   : > { %v939_v8 = vmul.f32 1.442695, %v935_v5 }
 0x408   : > { %1698 = vpow2.f32 %v941_v6 }
 0x409   : > { %1700 = vpow2.f32 %v939_v8 }
 0x40c   : > { %v931_v9 = vpop.xlane.xlu0 %930 }
 0x40d   : > { %v937_v10 = vsub.f32 %v921_v60, %v931_v9 }
 0x40f   : > { %v943_v11 = vmul.f32 1.442695, %v937_v10 }
 0x410   : > { %v934_v12 = vpop.xlane.xlu1 %933 }
 0x411   : > { %1702 = vpow2.f32 %v943_v11  ;;  %v938_v13 = vsub.f32 %v922_v0, %v934_v12 }
 0x412   : > { %v1699_v14 = vpop.eup %1698 }
 0x413   : > { %v1701_v15 = vpop.eup %1700  ;;  %v945_v16 = vmul.f32 1.442695, %v938_v13  ;;  %v950_v17 = vsel %vm384_vm0, %v1699_v14, 0.0 }
 0x414   : > { %951 = vadd.xlane.f32.xlu1 %v950_v17  ;;  %v947_v18 = vsel %vm384_vm0, %v1701_v15, 0.0 }
 0x415   : > { %1704 = vpow2.f32 %v945_v16  ;;  %948 = vadd.xlane.f32.xlu0 %v947_v18 }
 0x41b   : > { %v1703_v19 = vpop.eup %1702 }
 0x41c   : > { %v953_v20 = vsel %vm384_vm0, %v1703_v19, 0.0 }
 0x41d   : > { %954 = vadd.xlane.f32.xlu0 %v953_v20 }
 0x41f   : > { %v1705_v21 = vpop.eup %1704 }
 0x420   : > { %v956_v22 = vsel %vm384_vm0, %v1705_v21, 0.0 }
 0x421   : > { %957 = vadd.xlane.f32.xlu1 %v956_v22 }
 0x4a1   : > { %v952_v31 = vpop.xlane.xlu1 %951 }
 0x4a2   : > { %1706 = vrcp.f32 %v952_v31  ;;  %v949_v32 = vpop.xlane.xlu0 %948 }
 0x4a3   : > { %1708 = vrcp.f32 %v949_v32 }
 0x4aa   : > { %v955_v33 = vpop.xlane.xlu0 %954 }
 0x4ab   : > { %1710 = vrcp.f32 %v955_v33 }
 0x4ac   : > { %v1707_v34 = vpop.eup %1706 }
 0x4ad   : > { %v1709_v35 = vpop.eup %1708  ;;  %v962_v36 = vmul.f32 %v1707_v34, %v1699_v14 }
 0x4ae   : > { %v960_v37 = vmul.f32 %v1709_v35, %v1701_v15  ;;  %v958_v38 = vpop.xlane.xlu1 %957 }
 0x4af   : > { %968 = vst.msk [vmem:[#allocation4 + $0x8] sm:$0xff] %vm384_vm0, %v962_v36  ;;  %1712 = vrcp.f32 %v958_v38 }
 0x4b0   : > { %967 = vst.msk [vmem:[#allocation4] sm:$0xff] %vm384_vm0, %v960_v37 }
 0x4b5   : > { %v1711_v39 = vpop.eup %1710 }
 0x4b6   : > { %v964_v40 = vmul.f32 %v1711_v39, %v1703_v19  ;;  %v1059_v41 = vld [vmem:[#allocation4 + $0x8] sm:$0xff] }
 0x4b7   : > { %v1058_v42 = vld [vmem:[#allocation4] sm:$0xff] }
 0x4b8   : > { %969 = vst.msk [vmem:[#allocation4 + $0x10] sm:$0xff] %vm384_vm0, %v964_v40  ;;  %v1569_v43 = vpack.c.bf16 %v1059_v41, %v1058_v42 }
 0x4b9   : > { %v1713_v44 = vpop.eup %1712 }
 0x4ba   : > { %v966_v45 = vmul.f32 %v1713_v44, %v1705_v21  ;;  %1571 = vmatprep.subr.msk.bf16.mxu1 %vm1570_vm4, %v1569_v43 }
 0x4bb   : > { %1574 = vmatpush3.bf16.xpose.msk.msra.mxu1 %vm1570_vm4, %v1569_v43 }
 0x4bc   : > { %970 = vst.msk [vmem:[#allocation4 + $0x18] sm:$0xff] %vm384_vm0, %v966_v45 }
 0x4bf   : > { %v1060_v46 = vld [vmem:[#allocation4 + $0x10] sm:$0xff] }
 0x4c3   : > { %v1061_v47 = vld [vmem:[#allocation4 + $0x18] sm:$0xff] }
 0x4c4   : > { %v1575_v48 = vpack.c.bf16 %v1061_v47, %v1060_v46 }
 0x4c6   : > { %1577 = vmatprep.subr.msk.bf16.mxu1 %vm1570_vm4, %v1575_v48 }
 0x4c7   : > { %1580 = vmatpush3.bf16.xpose.msk.msra.mxu1 %vm1570_vm4, %v1575_v48 }
 0x4ce   : > { %1526 = vmatmul.mubr.msk.f32.vlgmr.msra.gmra.mrb[6].mxu1 %vm384_vm0, %v1516_v23 }
 0x5a1   : > { %v1527_v49 = vpop.f32.mrb[6].mxu1 }
 0x5a2   : > { %v1146_v7 = vpop.f32.mrb[7].mxu1 }
 0x5a3   : > { %1536 = vmatprep.mubr.msk.f32.mxu0 %vm384_vm0, %v1146_v7 }
 0x5a4   : > { %1537 = vmatmul.mubr.msk.f32.vlgmr.msra.gmra.mrb[8].mxu0 %vm384_vm0, %v1527_v49 }
 0x677   : > { %v1538_v51 = vpop.f32.mrb[8].mxu0 }
 0x678   : > { %v1244_v52 = vadd.f32 %v1538_v51, %v1412_v50  ;;  %v1238_v53 = vpop.f32.mrb[9].mxu0 }
 0x679   : > { %v1239_v54 = vadd.f32 %v1412_v50, %v1238_v53 }
 0x67a   : > { %1248 = vst.msk [vmem:[%s371_s24 + $0x8] sm:$0xff] %vm384_vm0, %v1244_v52 }
 0x67b   : > { %1247 = vst.msk [vmem:[%s371_s24] sm:$0xff] %vm384_vm0, %v1239_v54 }
 0x67c   : > { %1867 = shalt.err (!%p1864_p0)
}
 0x67d   : > { %s1868_s16 = scalar_lea.hbm %s2280_s10, 256  ;;  %s1872_s23 = scalar_lea.hbm %s2333_s8, 512 }
 0x67e   : > { %p1869_p10 = scmp.ne.s32.totalorder %s2280_s10, %s1868_s16  ;;  %p1873_p4 = scmp.lt.u32.totalorder %s2280_s10, %s2333_s8 }
 0x67f   : > { %p1874_p12 = scmp.lt.u32.totalorder %s1872_s23, %s1868_s16  ;;  %p1876_p8 = scmp.lt.u32.totalorder %s1868_s16, %s2280_s10 }
 0x680   : > { %p1870_p2 = pnand %p1869_p10, %p2359_p11 }
 0x681   : > { %p1875_p7 = por %p1874_p12, %p1873_p4 }
 0x682   : > { %p1871_p3 = pneg %p1870_p2 }
 0x683   : > { %p1877_p13 = por %p1876_p8, %p1875_p7 }
 0x685   : > { %p1878_p1 = pnand %p1877_p13, %p1871_p3 }
 0x687   : > { %1881 = shalt.err (!%p1878_p1)
}
 0x688   : > { %s1941_s22 = smov 128   ;;  %s1942_s14 = smov 8  }
 0x689   : > { %1609 = dma.vmem_to_hbm [thread:$0]  (%p2359_p11), %s2275_s17, 256, %s2280_s10, %s2284_s12, %s1941_s22, %s1941_s22, %s1942_s14  }
 0x68a PF: > { %s2360_s24 = sld [smem:[#allocation22_spill]]  ;;  %p1641_p6 = scmp.ge.s32.totalorder %s1928_s30, 2 }
 0x68b   : > { %s1278_s20 = sand.u32 1, %s1916_s27  }
 0x68c   : > { %s1279_s18 = scalar_lea.sflag [#allocation7], %s1278_s20 }
 0x690   : > { %p2361_p9 = scmp.ne.s32.totalorder %s2360_s24, 0 }
 0x692   : > { %p1628_p5 = pnand %p1641_p6, %p2361_p9 }
 0x694   : > { %1911 = dma.done.wait (!%p1628_p5), %s1279_s18, 256  }
 0x695   : > { %1913 = vsyncadd (!%p1628_p5), %s1279_s18, 4294967040  ;;  %s2362_s30 = sld [smem:[#allocation20_spill]]  ;;  %s2363_s26 = sld [smem:[#allocation19_spill]] }
 0x696   : > { %s2364_s29 = sld [smem:[#allocation21_spill]]  ;;  %s2365_s27 = smov %s1920_s28 }
 0x69b   : > { %p21_p0 = scmp.ge.s32.totalorder %s2362_s30, 4   ;;  %s2366_s28 = smov %s2363_s26 }
 0x69d   :  { %23 = sbr.rel (!%p21_p0) target bundleno = 8 (0x8), region = 108 }
 0x6a4   :  { %1284 = vsyncpa [#allocation6], 1 }
 0x6a5   :  { %1286 = vsyncpa [#allocation6 + $0x1], 1 }
 0x6a6   :  { %1287 = vsyncpa [#allocation9], 1 }
 0x6a7   :  { %1288 = vsyncpa [#allocation12], 1 }
 0x6a8   :  { %1289 = vsyncpa [#allocation7], 1 }
 0x6a9   :  { %1291 = vsyncpa [#allocation7 + $0x1], 1 }

</bundles_post_ra>
